<compile_context>
chip_gen: v7x
topology: tpu7x:2x2x1
jax: 0.10.0
libtpu: 0.0.40
codegen_flags: <defaults>
</compile_context>

<pallas_src>
import functools
import math

import jax
import jax.numpy as jnp
from jax.experimental import pallas as pl
from jax.experimental.pallas import tpu as pltpu


def _rnd_up(x, m):
    return ((x + m - 1) // m) * m


# 32 MiB scoped VMEM: fits double/triple-buffered 256x4608 bf16 blocks (~11 MiB)
# and stays inside v7x's 64 MiB physical VMEM; v5e/v6e (128 MiB) have headroom.
_VMEM_LIMIT = 32 * 1024 * 1024


# ---------------------------------------------------------------------------
# Fused single-K matmul kernel:  out = [relu]( A @ B + bias [+ residual] )
#   A:(tm,Kp) bf16   B:(Kp,tn) bf16 (BN scale pre-folded)   bias:(1,tn) f32
#   residual:(tm,tn) bf16 (optional).  No K grid axis, no acc scratch.
# ---------------------------------------------------------------------------
def _mm1k_kernel(*refs, relu, has_res):
    if has_res:
        a_ref, b_ref, bias_ref, r_ref, o_ref = refs
    else:
        a_ref, b_ref, bias_ref, o_ref = refs
        r_ref = None
    out = jnp.dot(a_ref[...], b_ref[...], preferred_element_type=jnp.float32)
    out = out + bias_ref[...]
    if has_res:
        out = out + r_ref[...].astype(jnp.float32)
    if relu:
        out = jnp.maximum(out, 0.0)
    o_ref[...] = out.astype(o_ref.dtype)


@functools.partial(jax.jit, static_argnames=("relu", "out_dtype"))
def matmul_bias(a, b, bias, residual=None, *, relu=False, out_dtype=jnp.bfloat16):
    """relu?((a @ b) + bias [+ residual]) with bf16 MXU inputs, f32 accumulate.

    b: (Kp, Np) bf16, pre-padded/pre-reshaped at parameter-build time.
    bias: (1, Np) f32.  a: (M, K) with K <= Kp (extra b rows are zero).
    All ResNet-50 contractions (K <= 4608) fit a single K block at tm=tn=256.
    """
    M, K = a.shape
    Kp, Np = b.shape

    tm = min(256, _rnd_up(M, 16))
    tn = min(256, Np)
    Mp = _rnd_up(M, tm)

    a = a.astype(jnp.bfloat16)
    if (Mp, Kp) != (M, K):
        a = jnp.pad(a, ((0, Mp - M), (0, Kp - K)))
    has_res = residual is not None
    inputs = [a, b, bias]
    if has_res:
        r = residual.astype(jnp.bfloat16)
        if Mp != M:
            r = jnp.pad(r, ((0, Mp - M), (0, 0)))
        inputs.append(r)

    m_blocks, n_blocks = Mp // tm, Np // tn
    # Keep the larger operand resident across the inner grid axis; the other
    # one streams and gets a 3-deep buffer when it has >= 3 steps to stream.
    i_outer = M * K >= K * Np
    if i_outer:
        grid = (m_blocks, n_blocks)
        a_map = lambda i, j: (i, 0)
        b_map = lambda i, j: (0, j)
        c_map = lambda i, j: (0, j)
        o_map = lambda i, j: (i, j)
        a_spec = pl.BlockSpec((tm, Kp), a_map)
        b_spec = (pl.BlockSpec((Kp, tn), b_map, pipeline_mode=pl.Buffered(3))
                  if n_blocks >= 3 else pl.BlockSpec((Kp, tn), b_map))
    else:
        grid = (n_blocks, m_blocks)
        a_map = lambda j, i: (i, 0)
        b_map = lambda j, i: (0, j)
        c_map = lambda j, i: (0, j)
        o_map = lambda j, i: (i, j)
        a_spec = (pl.BlockSpec((tm, Kp), a_map, pipeline_mode=pl.Buffered(3))
                  if m_blocks >= 3 else pl.BlockSpec((tm, Kp), a_map))
        b_spec = pl.BlockSpec((Kp, tn), b_map)

    in_specs = [a_spec, b_spec, pl.BlockSpec((1, tn), c_map)]
    if has_res:
        in_specs.append(pl.BlockSpec((tm, tn), o_map))

    out = pl.pallas_call(
        functools.partial(_mm1k_kernel, relu=relu, has_res=has_res),
        out_shape=jax.ShapeDtypeStruct((Mp, Np), out_dtype),
        grid_spec=pltpu.PrefetchScalarGridSpec(
            num_scalar_prefetch=0,
            grid=grid,
            in_specs=in_specs,
            out_specs=pl.BlockSpec((tm, tn), o_map),
        ),
        compiler_params=pltpu.CompilerParams(
            dimension_semantics=("parallel", "parallel"),
            vmem_limit_bytes=_VMEM_LIMIT),
    )(*inputs)
    return out[:M] if Mp != M else out


# ---------------------------------------------------------------------------
# Direct 3x3 / stride 1 / pad 1 conv kernel (no im2col).
# The padded image is flattened to (Hp*Wp, Cin) rows; tap (di, dj) is the
# contiguous row window starting at di*Wp + dj, so the kernel accumulates nine
# matmuls against w9[di*3+dj].  Outputs come out in an (H, Wp) layout whose two
# wrap-around columns per row are garbage and sliced off afterwards.
# ---------------------------------------------------------------------------
def _conv3x3_s1_kernel(x_ref, w_ref, b_ref, o_ref, *, Wp, relu):
    # x_ref: (L, Cin)  w_ref: (9, Cin, tn)  b_ref: (1, tn)  o_ref: (Mp, tn)
    Mp, tn = o_ref.shape
    acc = jnp.zeros((Mp, tn), jnp.float32)
    for di in range(3):
        for dj in range(3):
            a = x_ref[pl.ds(di * Wp + dj, Mp), :]
            acc = acc + jnp.dot(a, w_ref[di * 3 + dj],
                                preferred_element_type=jnp.float32)
    out = acc + b_ref[...]
    if relu:
        out = jnp.maximum(out, 0.0)
    o_ref[...] = out.astype(o_ref.dtype)


@functools.partial(jax.jit, static_argnames=("relu",))
def conv3x3_s1_bn(x, w9, bias, *, relu=True):
    """x: (N, H, W, Cin) bf16; w9: (9, Cin, Cout) bf16; bias: (1, Cout) f32."""
    N, H, W, Cin = x.shape
    Cout = w9.shape[2]
    Wp = W + 2
    M0 = H * Wp                            # valid output rows (padded-col layout)
    Mp = _rnd_up(M0, 16)
    L = _rnd_up(Mp + 2 * Wp + 2, 8)        # flat input rows the kernel may touch
    tn = min(256, Cout)

    xp = jnp.pad(x, ((0, 0), (1, 1), (1, 1), (0, 0)))
    xf = xp.reshape(N, (H + 2) * Wp, Cin)
    xf = jnp.pad(xf, ((0, 0), (0, L - (H + 2) * Wp), (0, 0)))

    out = pl.pallas_call(
        functools.partial(_conv3x3_s1_kernel, Wp=Wp, relu=relu),
        out_shape=jax.ShapeDtypeStruct((N, Mp, Cout), jnp.bfloat16),
        grid_spec=pltpu.PrefetchScalarGridSpec(
            num_scalar_prefetch=0,
            grid=(N, Cout // tn),
            in_specs=[pl.BlockSpec((None, L, Cin), lambda n, co: (n, 0, 0)),
                      pl.BlockSpec((9, Cin, tn), lambda n, co: (0, 0, co)),
                      pl.BlockSpec((1, tn), lambda n, co: (0, co))],
            out_specs=pl.BlockSpec((None, Mp, tn), lambda n, co: (n, 0, co)),
        ),
        compiler_params=pltpu.CompilerParams(
            dimension_semantics=("parallel", "parallel"),
            vmem_limit_bytes=_VMEM_LIMIT),
    )(xf, w9, bias)
    return out[:, :M0, :].reshape(N, H, Wp, Cout)[:, :, :W, :]


# ---------------------------------------------------------------------------
# MaxPool2d(kernel=3, stride=2, padding=1): single Pallas pass over the four
# stride-2 phase decimations of the padded input (H, W even).
# ---------------------------------------------------------------------------
def _maxpool_kernel(p00_ref, p01_ref, p10_ref, p11_ref, o_ref):
    Ho, Wo, _ = o_ref.shape
    p00 = p00_ref[...]
    p01 = p01_ref[...]
    p10 = p10_ref[...]
    p11 = p11_ref[...]
    m = p00[:Ho, :Wo]
    m = jnp.maximum(m, p00[:Ho, 1:Wo + 1])
    m = jnp.maximum(m, p00[1:Ho + 1, :Wo])
    m = jnp.maximum(m, p00[1:Ho + 1, 1:Wo + 1])
    m = jnp.maximum(m, p01[:Ho, :Wo])
    m = jnp.maximum(m, p01[1:Ho + 1, :Wo])
    m = jnp.maximum(m, p10[:Ho, :Wo])
    m = jnp.maximum(m, p10[:Ho, 1:Wo + 1])
    m = jnp.maximum(m, p11[:Ho, :Wo])
    o_ref[...] = m


@jax.jit
def maxpool_3x3_s2(x):
    N, H, W, C = x.shape
    Ho, Wo = H // 2, W // 2
    neg = jnp.finfo(x.dtype).min          # finite bf16 lowest (no -inf)
    xp = jnp.pad(x, ((0, 0), (1, 1), (1, 1), (0, 0)), constant_values=neg)
    phases = [xp[:, a::2, b::2, :][:, :Ho + 1, :Wo + 1, :]
              for a in (0, 1) for b in (0, 1)]
    return pl.pallas_call(
        _maxpool_kernel,
        out_shape=jax.ShapeDtypeStruct((N, Ho, Wo, C), x.dtype),
        grid=(N,),
        in_specs=[pl.BlockSpec((None, Ho + 1, Wo + 1, C),
                               lambda n: (n, 0, 0, 0))] * 4,
        out_specs=pl.BlockSpec((None, Ho, Wo, C), lambda n: (n, 0, 0, 0)),
        compiler_params=pltpu.CompilerParams(
            dimension_semantics=("parallel",),
            vmem_limit_bytes=_VMEM_LIMIT),
    )(*phases)


# ---------------------------------------------------------------------------
# Global average pool, tiled over channel blocks
# ---------------------------------------------------------------------------
def _avgpool_kernel(x_ref, o_ref, *, inv_hw):
    o_ref[...] = jnp.sum(x_ref[...].astype(jnp.float32), axis=1) * inv_hw


@jax.jit
def avgpool_global(x):
    """x: (N, H, W, C) NHWC bf16 -> (N, C) f32 global mean over H, W."""
    N, H, W, C = x.shape
    HW = H * W
    Np = _rnd_up(N, 8)
    Cp = _rnd_up(C, 128)
    tc = math.gcd(Cp, 512)
    xr = jnp.pad(x.reshape(N, HW, C), ((0, Np - N), (0, 0), (0, Cp - C)))
    out = pl.pallas_call(
        functools.partial(_avgpool_kernel, inv_hw=1.0 / HW),
        out_shape=jax.ShapeDtypeStruct((Np, Cp), jnp.float32),
        grid=(Cp // tc,),
        in_specs=[pl.BlockSpec((Np, HW, tc), lambda c: (0, 0, c))],
        out_specs=pl.BlockSpec((Np, tc), lambda c: (0, c)),
        compiler_params=pltpu.CompilerParams(vmem_limit_bytes=_VMEM_LIMIT),
    )(xr)
    return out[:N, :C]


# ---------------------------------------------------------------------------
# Layer wrappers
# ---------------------------------------------------------------------------
@functools.partial(jax.jit, static_argnames=("stride", "relu"))
def conv1x1_bn(x, w, bias, residual=None, *, stride=1, relu=False):
    """1x1 conv with pre-folded BN; bias / residual / ReLU fused in the matmul."""
    N, H, W, _ = x.shape
    Cout = w.shape[1]
    if stride > 1:
        x = x[:, ::stride, ::stride, :]
        H, W = x.shape[1], x.shape[2]
    a = x.reshape(N * H * W, x.shape[-1])
    res2d = None if residual is None else residual.reshape(N * H * W, Cout)
    out = matmul_bias(a, w, bias, res2d, relu=relu)
    return out.reshape(N, H, W, Cout)


@functools.partial(jax.jit, static_argnames=("ksize", "stride", "padding", "relu"))
def conv_im2col_bn(x, w2d, bias, *, ksize, stride, padding, relu):
    """im2col conv: only the 7x7 stem and the three stride-2 3x3 convs."""
    N, H, W, Cin = x.shape
    Cout = w2d.shape[1]
    Ho = (H + 2 * padding - ksize) // stride + 1
    Wo = (W + 2 * padding - ksize) // stride + 1
    xp = jnp.pad(x, ((0, 0), (padding, padding), (padding, padding), (0, 0)))
    cols = [xp[:, i:i + stride * Ho:stride, j:j + stride * Wo:stride, :]
            for i in range(ksize) for j in range(ksize)]
    a = jnp.concatenate(cols, axis=-1).reshape(N * Ho * Wo, ksize * ksize * Cin)
    out = matmul_bias(a, w2d, bias, relu=relu)    # pads K to w2d's Kp if needed
    return out.reshape(N, Ho, Wo, Cout)


def bottleneck(x, p):
    stride = 2 if "w2s2" in p else 1
    if "wd" in p:
        identity = conv1x1_bn(x, p["wd"], p["bd"], stride=stride, relu=False)
    else:
        identity = x
    out = conv1x1_bn(x, p["w1"], p["b1"], relu=True)
    if stride == 1:
        out = conv3x3_s1_bn(out, p["w2"], p["b2"], relu=True)
    else:
        out = conv_im2col_bn(out, p["w2s2"], p["b2"],
                             ksize=3, stride=2, padding=1, relu=True)
    # Residual add + final ReLU fused into the third conv's matmul epilogue.
    out = conv1x1_bn(out, p["w3"], p["b3"], residual=identity, relu=True)
    return out


def res50_forward(params, x_nchw):
    """Matches Res50.forward: returns (pooled_features, fc_logits)."""
    x = jnp.transpose(x_nchw, (0, 2, 3, 1)).astype(jnp.bfloat16)  # NCHW -> NHWC
    x = conv_im2col_bn(x, params["conv1_w"], params["conv1_b"],
                       ksize=7, stride=2, padding=3, relu=True)
    x = maxpool_3x3_s2(x)
    for layer in params["layers"]:
        for block in layer:
            x = bottleneck(x, block)
    feat = avgpool_global(x)                                      # (N, 2048) f32
    logits = matmul_bias(feat, params["fc_w"], params["fc_b"],
                         relu=False, out_dtype=jnp.float32)[:, :1000]
    return feat, logits


# ---------------------------------------------------------------------------
# Deterministic synthetic parameters (ResNet-50 shapes), stored in kernel-ready
# layouts: BN folded, reshaped, padded and cast once at build time.
# ---------------------------------------------------------------------------
def _init_conv(key, kh, kw, cin, cout):
    fan_in = kh * kw * cin
    return jax.random.normal(key, (kh, kw, cin, cout), jnp.float32) * (
        0.5 / math.sqrt(fan_in))


def _init_bn(key, c):
    k1, k2, k3, k4 = jax.random.split(key, 4)
    gamma = 1.0 + 0.1 * jax.random.normal(k1, (c,), jnp.float32)
    beta = 0.1 * jax.random.normal(k2, (c,), jnp.float32)
    mean = 0.1 * jax.random.normal(k3, (c,), jnp.float32)
    var = 1.0 + 0.1 * jax.random.uniform(k4, (c,), jnp.float32)
    scale = gamma / jnp.sqrt(var + 1e-5)
    bias = beta - mean * scale
    return scale, bias


def _fold_bn(w, bn):
    scale, bias = bn
    w_f = (w * scale[None, None, None, :]).astype(jnp.bfloat16)
    return w_f, bias.reshape(1, -1).astype(jnp.float32)


def make_params(key):
    keys = iter(jax.random.split(key, 256))
    nk = lambda: next(keys)

    # Stem: (7,7,3,64) -> (147,64), pre-padded to the kernel's K block (160).
    w1, b1 = _fold_bn(_init_conv(nk(), 7, 7, 3, 64), _init_bn(nk(), 64))
    params = {"conv1_w": jnp.pad(w1.reshape(147, 64), ((0, 13), (0, 0))),
              "conv1_b": b1}

    layers = []
    in_c = 64
    cfg = [(3, 64, 1), (4, 128, 2), (6, 256, 2), (3, 512, 2)]    # ResNet-50
    for n_blocks, width, stride in cfg:
        out_c = width * 4
        blocks = []
        for b in range(n_blocks):
            s = stride if b == 0 else 1
            w1b, b1b = _fold_bn(_init_conv(nk(), 1, 1, in_c, width),
                                _init_bn(nk(), width))
            w2b, b2b = _fold_bn(_init_conv(nk(), 3, 3, width, width),
                                _init_bn(nk(), width))
            w3b, b3b = _fold_bn(_init_conv(nk(), 1, 1, width, out_c),
                                _init_bn(nk(), out_c))
            blk = {"w1": w1b.reshape(in_c, width), "b1": b1b,
                   "b2": b2b,
                   "w3": w3b.reshape(width, out_c), "b3": b3b}
            if s == 1:
                blk["w2"] = w2b.reshape(9, width, width)      # direct-conv layout
            else:
                blk["w2s2"] = w2b.reshape(9 * width, width)   # im2col layout
            if b == 0:   # downsample branch (channel change and/or stride)
                wdb, bdb = _fold_bn(_init_conv(nk(), 1, 1, in_c, out_c),
                                    _init_bn(nk(), out_c))
                blk["wd"] = wdb.reshape(in_c, out_c)
                blk["bd"] = bdb
            blocks.append(blk)
            in_c = out_c
        layers.append(blocks)
    params["layers"] = layers

    # FC pre-padded to a lane-aligned (2048, 1024); logits sliced back to 1000.
    fc_w = jax.random.normal(nk(), (2048, 1000), jnp.float32) * 0.01
    fc_b = jax.random.normal(nk(), (1000,), jnp.float32) * 0.01
    params["fc_w"] = jnp.pad(fc_w.astype(jnp.bfloat16), ((0, 0), (0, 24)))
    params["fc_b"] = jnp.pad(fc_b, (0, 24)).reshape(1, 1024)
    return params


if __name__ == "__main__":
    key = jax.random.PRNGKey(0)
    pkey, xkey = jax.random.split(key)
    params = make_params(pkey)
    # Small input consistent with the module: NCHW, 3 channels, 64x64 spatial
    # (large enough to survive the 5 stride-2 stages).
    x = jax.random.normal(xkey, (2, 3, 64, 64), jnp.float32)
    feat, logits = res50_forward(params, x)
    jax.block_until_ready((feat, logits))
    assert feat.shape == (2, 2048), feat.shape
    assert logits.shape == (2, 1000), logits.shape
    print("KERNEL_OK")
</pallas_src>

<mosaic_0001>
module attributes {stable_mosaic.version = 11 : i64} {
  func.func @_mm1k_kernel(%arg0: i32, %arg1: i32, %arg2: memref<256x160xbf16, #tpu.memory_space<vmem>>, %arg3: memref<160x64xbf16, #tpu.memory_space<vmem>>, %arg4: memref<1x64xf32, #tpu.memory_space<vmem>>, %arg5: memref<256x64xbf16, #tpu.memory_space<vmem>>) attributes {dimension_semantics = [#tpu.dimension_semantics<parallel>, #tpu.dimension_semantics<parallel>], iteration_bounds = array<i64: 8, 1>, scalar_prefetch = 0 : i64, scratch_operands = 0 : i64, tpu.core_type = #tpu.core_type<tc>, window_params = [{transform_indices = @transform_0, window_bounds = array<i64: 256, 160>}, {transform_indices = @transform_1, window_bounds = array<i64: 160, 64>}, {transform_indices = @transform_2, window_bounds = array<i64: 1, 64>}, {transform_indices = @transform_3, window_bounds = array<i64: 256, 64>}]} {
    %c0 = arith.constant 0 : index
    %c0_0 = arith.constant 0 : index
    %0 = vector.load %arg2[%c0, %c0_0] : memref<256x160xbf16, #tpu.memory_space<vmem>>, vector<256x160xbf16>
    %c0_1 = arith.constant 0 : index
    %c0_2 = arith.constant 0 : index
    %1 = vector.load %arg3[%c0_1, %c0_2] : memref<160x64xbf16, #tpu.memory_space<vmem>>, vector<160x64xbf16>
    %cst = arith.constant dense<0.000000e+00> : vector<256x64xf32>
    %2 = tpu.matmul %0, %1, %cst {dimension_numbers = #tpu.dot_dimension_numbers<[1], [0], [0], [1], [0, 0, 1, 1], [], []>} : vector<256x160xbf16>, vector<160x64xbf16>, vector<256x64xf32> -> vector<256x64xf32>
    %c0_3 = arith.constant 0 : index
    %c0_4 = arith.constant 0 : index
    %3 = vector.load %arg4[%c0_3, %c0_4] : memref<1x64xf32, #tpu.memory_space<vmem>>, vector<1x64xf32>
    %4 = vector.broadcast %3 : vector<1x64xf32> to vector<256x64xf32>
    %5 = arith.addf %2, %4 : vector<256x64xf32>
    %cst_5 = arith.constant 0.000000e+00 : f32
    %6 = vector.broadcast %cst_5 : f32 to vector<256x64xf32>
    %7 = arith.maximumf %5, %6 : vector<256x64xf32>
    %8 = arith.truncf %7 : vector<256x64xf32> to vector<256x64xbf16>
    %c0_6 = arith.constant 0 : index
    %c0_7 = arith.constant 0 : index
    %9 = vector.load %arg5[%c0_6, %c0_7] : memref<256x64xbf16, #tpu.memory_space<vmem>>, vector<256x64xbf16>
    tpu.vector_store %arg5[%c0_6, %c0_7], %8 {strides = array<i32>} : memref<256x64xbf16, #tpu.memory_space<vmem>>, vector<256x64xbf16>,
    return
  }
  func.func @transform_0(%arg0: i32, %arg1: i32) -> (i32, i32) {
    %c0_i32 = arith.constant 0 : i32
    %c0_i32_0 = arith.constant 0 : i32
    return %arg0, %c0_i32 : i32, i32
  }
  func.func @transform_1(%arg0: i32, %arg1: i32) -> (i32, i32) {
    %c0_i32 = arith.constant 0 : i32
    %c0_i32_0 = arith.constant 0 : i32
    return %c0_i32, %arg1 : i32, i32
  }
  func.func @transform_2(%arg0: i32, %arg1: i32) -> (i32, i32) {
    %c0_i32 = arith.constant 0 : i32
    %c0_i32_0 = arith.constant 0 : i32
    return %c0_i32, %arg1 : i32, i32
  }
  func.func @transform_3(%arg0: i32, %arg1: i32) -> (i32, i32) {
    %c0_i32 = arith.constant 0 : i32
    return %arg0, %arg1 : i32, i32
  }
}

</mosaic_0001>

<bundles_post_ra>
// kernel: matmul_bias.1
= control target key start
LH: loop header
LB: loop body
LE: loop exit
PB: predicated region body
PF: predicated region fallthrough
CT: control target
= control target key end

     0   :  { %s1283_s12 = smov 0   ;;  %s1285_s13 = smov 0   ;;  %s1503_s0 = inlined_call_operand.vmem [shape: bf16[2048,160], index: 0, kind: input, shape index: {}]   ;;  %s1504_s1 = inlined_call_operand.vmem [shape: bf16[160,64], index: 1, kind: input, shape index: {}]   ;;  %s1505_s2 = inlined_call_operand.vmem [shape: f32[1,64], index: 2, kind: input, shape index: {}]   ;;  %s1506_s3 = inlined_call_operand.vmem [shape: bf16[2048,64], index: 3, kind: output, shape index: {}]  }
   0x1   :  { %s1287_s14 = smov 0  }
   0x2 LB: > { %s25_s15 = sadd.s32 1, %s1256_s13  ;;  %p1003_p0 = scmp.ge.s32.totalorder %s1260_s14, 1  ;;  %s1260_s14 = sphi %s1287_s14, %s13_s14   ;;  %s1256_s13 = sphi %s1285_s13, %s1508_s13   ;;  %s1252_s12 = sphi %s1283_s12, %s1507_s12  }
   0x3   : > { %p27_p1 = scmp.ge.s32.totalorder %s25_s15, 8  ;;  %p170_p2 = scmp.lt.s32.totalorder %s1260_s14, 9 }
   0x5   : > { %s1510_s15 = smov (%p27_p1, %s25_s15), 0  ;;  %p171_p3 = pnand %p1003_p0, %p170_p2 }
   0x6   : > { %v1180_v0 = vld [vmem:[%s1504_s1] sm:$0xff] (!%p171_p3)   ;;  %v1262_v1 = vmov (!%p171_p3), 0   ;;  %s1004_s18 = sshll.u32 (!%p171_p3), %s1252_s12, 5  ;;  %v1181_v2 = vld [vmem:[%s1504_s1 + $0x8] sm:$0xff] (!%p171_p3)   ;;  %v1182_v3 = vld [vmem:[%s1504_s1 + $0x10] sm:$0xff] (!%p171_p3)   ;;  %vm492_vm0 = vcmask (!%p171_p3), 261120  }
   0x7   : > { %174 = sbr.rel (%p171_p3) target bundleno = 324 (0x144), region = 32  ;;  %541 = vmatprep.subr.bf16.mxu0 (!%p171_p3), %v1262_v1  ;;  %1135 = vmatprep.subr.bf16.mxu1 (!%p171_p3), %v1262_v1  ;;  %p206_p4 = scmp.lt.s32.totalorder (!%p171_p3), %s1004_s18, 255  ;;  %v1183_v4 = vld [vmem:[%s1504_s1 + $0x18] sm:$0xff] (!%p171_p3)   ;;  %v1184_v7 = vld [vmem:[%s1504_s1 + $0x20] sm:$0xff] (!%p171_p3)   ;;  %v1185_v8 = vld [vmem:[%s1504_s1 + $0x28] sm:$0xff] (!%p171_p3)   ;;  %vm862_vm1 = vcmask (!%p171_p3), 519168  }
   0x8   : > { %542 = vmatpush1.bf16.msra.mxu0 (!%p171_p3), %v1180_v0  ;;  %1145 = vmatpush1.bf16.msra.mxu1 (!%p171_p3), %v1180_v0  ;;  %v1186_v9 = vld [vmem:[%s1504_s1 + $0x30] sm:$0xff] (!%p171_p3)   ;;  %v1187_v10 = vld [vmem:[%s1504_s1 + $0x38] sm:$0xff] (!%p171_p3)   ;;  %v1188_v11 = vld [vmem:[%s1504_s1 + $0x40] sm:$0xff] (!%p171_p3)  }
   0x9   : > { %543 = vmatprep.subr.bf16.mxu0 (!%p171_p3), %v1262_v1  ;;  %1136 = vmatprep.subr.bf16.mxu1 (!%p171_p3), %v1262_v1  ;;  %v1189_v12 = vld [vmem:[%s1504_s1 + $0x48] sm:$0xff] (!%p171_p3)   ;;  %v1390_v43 = vld [vmem:[%s1505_s2] ss:$0 sm:$0xff] (!%p171_p3) }
   0xc   : > { %544 = vmatpush1.bf16.msra.mxu0 (!%p171_p3), %v1181_v2  ;;  %1146 = vmatpush1.bf16.msra.mxu1 (!%p171_p3), %v1181_v2 }
   0xd   : > { %545 = vmatprep.subr.bf16.mxu0 (!%p171_p3), %v1262_v1  ;;  %1137 = vmatprep.subr.bf16.mxu1 (!%p171_p3), %v1262_v1 }
   0xe   : > { %s1512_s18 = smov (!%p206_p4, %s1004_s18), 255 }
   0xf   : > { %s1102_s23 = sshll.u32 %s1512_s18, 3  ;;  %s1008_s20 = sshll.u32 %s1512_s18, 2 }
  0x10   : > { %s1316_s26 = scalar_lea.vmem %s1503_s0, %s1102_s23  ;;  %546 = vmatpush1.bf16.msra.mxu0 %v1182_v3  ;;  %1147 = vmatpush1.bf16.msra.mxu1 %v1182_v3  ;;  %s1400_s18 = scalar_lea.vmem %s1506_s3, %s1008_s20 }
  0x11   : > { %547 = vmatprep.subr.bf16.mxu0 %v1262_v1  ;;  %1138 = vmatprep.subr.bf16.mxu1 %v1262_v1  ;;  %v1192_v5 = vld [vmem:[%s1316_s26 + $0x4] ss:$8 sps:$4 sm:$0xff]   ;;  %v1190_v13 = vld [vmem:[%s1316_s26] ss:$8 sps:$4 sm:$0xff]   ;;  %v1196_v15 = vld [vmem:[%s1316_s26 + $0x14] ss:$8 sps:$4 sm:$0xff]  }
  0x12   : > { %v1195_v6 = vld [vmem:[%s1316_s26 + $0x84] ss:$8 sps:$4 sm:$0xff]   ;;  %1052 = vmatprep.mubr.msk.bf16.mxu0 %vm492_vm0, %v1192_v5  ;;  %v1193_v14 = vld [vmem:[%s1316_s26 + $0x80] ss:$8 sps:$4 sm:$0xff]   ;;  %v1198_v16 = vld [vmem:[%s1316_s26 + $0x94] ss:$8 sps:$4 sm:$0xff]  }
  0x13   : > { %1060 = vmatprep.mubr.msk.bf16.mxu1 %vm492_vm0, %v1195_v6  ;;  %v1200_v17 = vld [vmem:[%s1316_s26 + $0x10] ss:$8 sps:$4 sm:$0xff]   ;;  %v1202_v19 = vld [vmem:[%s1316_s26 + $0x24] ss:$8 sps:$4 sm:$0xff]   ;;  %v1206_v21 = vld [vmem:[%s1316_s26 + $0x20] ss:$8 sps:$4 sm:$0xff]  }
  0x14   : > { %548 = vmatpush1.bf16.msra.mxu0 %v1183_v4  ;;  %1148 = vmatpush1.bf16.msra.mxu1 %v1183_v4  ;;  %v1201_v18 = vld [vmem:[%s1316_s26 + $0x90] ss:$8 sps:$4 sm:$0xff]   ;;  %v1204_v20 = vld [vmem:[%s1316_s26 + $0xa4] ss:$8 sps:$4 sm:$0xff]   ;;  %v1207_v22 = vld [vmem:[%s1316_s26 + $0xa0] ss:$8 sps:$4 sm:$0xff]  }
  0x15   : > { %549 = vmatprep.subr.bf16.mxu0 %v1262_v1  ;;  %1139 = vmatprep.subr.bf16.mxu1 %v1262_v1  ;;  %v1208_v23 = vld [vmem:[%s1316_s26 + $0x34] ss:$8 sps:$4 sm:$0xff]   ;;  %v1212_v25 = vld [vmem:[%s1316_s26 + $0x30] ss:$8 sps:$4 sm:$0xff]   ;;  %v1214_v27 = vld [vmem:[%s1316_s26 + $0x44] ss:$8 sps:$4 sm:$0xff]  }
  0x16   : > { %v1210_v24 = vld [vmem:[%s1316_s26 + $0xb4] ss:$8 sps:$4 sm:$0xff]   ;;  %v1213_v26 = vld [vmem:[%s1316_s26 + $0xb0] ss:$8 sps:$4 sm:$0xff]   ;;  %v1216_v28 = vld [vmem:[%s1316_s26 + $0xc4] ss:$8 sps:$4 sm:$0xff]  }
  0x17   : > { %v1218_v29 = vld [vmem:[%s1316_s26 + $0x40] ss:$8 sps:$4 sm:$0xff]   ;;  %v1220_v31 = vld [vmem:[%s1316_s26 + $0x54] ss:$8 sps:$4 sm:$0xff]   ;;  %v1224_v33 = vld [vmem:[%s1316_s26 + $0x50] ss:$8 sps:$4 sm:$0xff]  }
  0x18   : > { %550 = vmatpush1.bf16.msra.mxu0 %v1184_v7  ;;  %1149 = vmatpush1.bf16.msra.mxu1 %v1184_v7  ;;  %v1219_v30 = vld [vmem:[%s1316_s26 + $0xc0] ss:$8 sps:$4 sm:$0xff]   ;;  %v1222_v32 = vld [vmem:[%s1316_s26 + $0xd4] ss:$8 sps:$4 sm:$0xff]   ;;  %v1225_v34 = vld [vmem:[%s1316_s26 + $0xd0] ss:$8 sps:$4 sm:$0xff]  }
  0x19   : > { %551 = vmatprep.subr.bf16.mxu0 %v1262_v1  ;;  %1140 = vmatprep.subr.bf16.mxu1 %v1262_v1  ;;  %v1226_v35 = vld [vmem:[%s1316_s26 + $0x64] ss:$8 sps:$4 sm:$0xff]   ;;  %v1230_v37 = vld [vmem:[%s1316_s26 + $0x60] ss:$8 sps:$4 sm:$0xff]   ;;  %v1232_v39 = vld [vmem:[%s1316_s26 + $0x74] ss:$8 sps:$4 sm:$0xff]  }
  0x1a   : > { %v1228_v36 = vld [vmem:[%s1316_s26 + $0xe4] ss:$8 sps:$4 sm:$0xff]   ;;  %v1231_v38 = vld [vmem:[%s1316_s26 + $0xe0] ss:$8 sps:$4 sm:$0xff]   ;;  %v1234_v40 = vld [vmem:[%s1316_s26 + $0xf4] ss:$8 sps:$4 sm:$0xff]  }
  0x1b   : > { %v1236_v41 = vld [vmem:[%s1316_s26 + $0x70] ss:$8 sps:$4 sm:$0xff]  }
  0x1c   : > { %552 = vmatpush1.bf16.msra.mxu0 %v1185_v8  ;;  %1150 = vmatpush1.bf16.msra.mxu1 %v1185_v8  ;;  %v1237_v42 = vld [vmem:[%s1316_s26 + $0xf0] ss:$8 sps:$4 sm:$0xff]  }
  0x1d   : > { %553 = vmatprep.subr.bf16.mxu0 %v1262_v1  ;;  %1141 = vmatprep.subr.bf16.mxu1 %v1262_v1 }
  0x20   : > { %554 = vmatpush1.bf16.msra.mxu0 %v1186_v9  ;;  %1151 = vmatpush1.bf16.msra.mxu1 %v1186_v9 }
  0x21   : > { %555 = vmatprep.subr.bf16.mxu0 %v1262_v1  ;;  %1142 = vmatprep.subr.bf16.mxu1 %v1262_v1 }
  0x24   : > { %556 = vmatpush1.bf16.msra.mxu0 %v1187_v10  ;;  %1152 = vmatpush1.bf16.msra.mxu1 %v1187_v10 }
  0x25   : > { %557 = vmatprep.subr.bf16.mxu0 %v1262_v1  ;;  %1143 = vmatprep.subr.bf16.mxu1 %v1262_v1 }
  0x28   : > { %558 = vmatpush1.bf16.msra.mxu0 %v1188_v11  ;;  %1153 = vmatpush1.bf16.msra.mxu1 %v1188_v11 }
  0x29   : > { %559 = vmatprep.subr.bf16.mxu0 %v1262_v1  ;;  %1144 = vmatprep.subr.bf16.mxu1 %v1262_v1 }
  0x2c   : > { %560 = vmatpush1.bf16.msra.mxu0 %v1189_v12  ;;  %1154 = vmatpush1.bf16.msra.mxu1 %v1189_v12 }
  0x2f   : > { %574 = vmatmul.mubr.bf16.vlgmr.msra.gmra.mrb[0].mxu0 %v1190_v13  ;;  %638 = vmatmul.mubr.bf16.vlgmr.msra.gmra.mrb[0].mxu1 %v1193_v14 }
  0x30   : > { %1053 = vmatprep.mubr.msk.bf16.mxu0 %vm492_vm0, %v1196_v15  ;;  %1061 = vmatprep.mubr.msk.bf16.mxu1 %vm492_vm0, %v1198_v16 }
  0x37   : > { %582 = vmatmul.mubr.bf16.gmra.mrb[4].mxu0 %v1200_v17  ;;  %646 = vmatmul.mubr.bf16.gmra.mrb[4].mxu1 %v1201_v18 }
  0x38   : > { %1054 = vmatprep.mubr.msk.bf16.mxu0 %vm492_vm0, %v1202_v19  ;;  %1062 = vmatprep.mubr.msk.bf16.mxu1 %vm492_vm0, %v1204_v20 }
  0x3f   : > { %590 = vmatmul.mubr.bf16.gmra.mrb[8].mxu0 %v1206_v21  ;;  %654 = vmatmul.mubr.bf16.gmra.mrb[8].mxu1 %v1207_v22 }
  0x40   : > { %1055 = vmatprep.mubr.msk.bf16.mxu0 %vm492_vm0, %v1208_v23  ;;  %1063 = vmatprep.mubr.msk.bf16.mxu1 %vm492_vm0, %v1210_v24 }
  0x47   : > { %598 = vmatmul.mubr.bf16.gmra.mrb[12].mxu0 %v1212_v25  ;;  %662 = vmatmul.mubr.bf16.gmra.mrb[12].mxu1 %v1213_v26 }
  0x48   : > { %1056 = vmatprep.mubr.msk.bf16.mxu0 %vm492_vm0, %v1214_v27  ;;  %1064 = vmatprep.mubr.msk.bf16.mxu1 %vm492_vm0, %v1216_v28 }
  0x4f   : > { %606 = vmatmul.mubr.bf16.gmra.mrb[16].mxu0 %v1218_v29  ;;  %670 = vmatmul.mubr.bf16.gmra.mrb[16].mxu1 %v1219_v30 }
  0x50   : > { %1057 = vmatprep.mubr.msk.bf16.mxu0 %vm492_vm0, %v1220_v31  ;;  %1065 = vmatprep.mubr.msk.bf16.mxu1 %vm492_vm0, %v1222_v32 }
  0x57   : > { %614 = vmatmul.mubr.bf16.gmra.mrb[20].mxu0 %v1224_v33  ;;  %678 = vmatmul.mubr.bf16.gmra.mrb[20].mxu1 %v1225_v34 }
  0x58   : > { %1058 = vmatprep.mubr.msk.bf16.mxu0 %vm492_vm0, %v1226_v35  ;;  %1066 = vmatprep.mubr.msk.bf16.mxu1 %vm492_vm0, %v1228_v36 }
  0x5f   : > { %622 = vmatmul.mubr.bf16.gmra.mrb[24].mxu0 %v1230_v37  ;;  %686 = vmatmul.mubr.bf16.gmra.mrb[24].mxu1 %v1231_v38 }
  0x60   : > { %1059 = vmatprep.mubr.msk.bf16.mxu0 %vm492_vm0, %v1232_v39  ;;  %1067 = vmatprep.mubr.msk.bf16.mxu1 %vm492_vm0, %v1234_v40 }
  0x67   : > { %630 = vmatmul.mubr.bf16.gmra.mrb[28].mxu0 %v1236_v41  ;;  %694 = vmatmul.mubr.bf16.gmra.mrb[28].mxu1 %v1237_v42 }
 0x102   : > { %v575_v44 = vpop.f32.mrb[0].mxu0  ;;  %v639_v45 = vpop.f32.mrb[0].mxu1 }
 0x103   : > { %v576_v46 = vadd.f32 %v1390_v43, %v575_v44  ;;  %v640_v47 = vadd.f32 %v1390_v43, %v639_v45  ;;  %v577_v48 = vpop.f32.mrb[1].mxu0  ;;  %v641_v49 = vpop.f32.mrb[1].mxu1 }
 0x104   : > { %v578_v50 = vpop.f32.mrb[2].mxu0  ;;  %v642_v51 = vpop.f32.mrb[2].mxu1 }
 0x105   : > { %v702_v52 = vmax.f32 %v576_v46, 0.0  ;;  %v718_v53 = vmax.f32 %v640_v47, 0.0  ;;  %v579_v54 = vadd.f32 %v1390_v43, %v578_v50  ;;  %v643_v55 = vadd.f32 %v1390_v43, %v642_v51  ;;  %v580_v56 = vpop.f32.mrb[3].mxu0  ;;  %v644_v57 = vpop.f32.mrb[3].mxu1 }
 0x107   : > { %v1103_v58 = vpack.c.bf16 %v702_v52, %v702_v52  ;;  %v1119_v59 = vpack.c.bf16 %v718_v53, %v718_v53  ;;  %v703_v60 = vmax.f32 %v579_v54, 0.0  ;;  %v719_v61 = vmax.f32 %v643_v55, 0.0 }
 0x109   : > { %863 = vst.msk [vmem:[%s1400_s18] sm:$0xf] %vm862_vm1, %v1103_v58  ;;  %879 = vst.msk [vmem:[%s1400_s18 + $0x40] sm:$0xf] %vm862_vm1, %v1119_v59  ;;  %v1104_v62 = vpack.c.bf16 %v703_v60, %v703_v60  ;;  %v1120_v63 = vpack.c.bf16 %v719_v61, %v719_v61 }
 0x10a   : > { %v583_v0 = vpop.f32.mrb[4].mxu0  ;;  %v647_v1 = vpop.f32.mrb[4].mxu1 }
 0x10b   : > { %864 = vst.msk [vmem:[%s1400_s18 + $0x4] sm:$0xf] %vm862_vm1, %v1104_v62  ;;  %880 = vst.msk [vmem:[%s1400_s18 + $0x44] sm:$0xf] %vm862_vm1, %v1120_v63  ;;  %v584_v2 = vadd.f32 %v1390_v43, %v583_v0  ;;  %v648_v3 = vadd.f32 %v1390_v43, %v647_v1  ;;  %v585_v4 = vpop.f32.mrb[5].mxu0  ;;  %v649_v5 = vpop.f32.mrb[5].mxu1 }
 0x10c   : > { %v586_v6 = vpop.f32.mrb[6].mxu0  ;;  %v650_v7 = vpop.f32.mrb[6].mxu1 }
 0x10d   : > { %v704_v8 = vmax.f32 %v584_v2, 0.0  ;;  %v720_v9 = vmax.f32 %v648_v3, 0.0  ;;  %v587_v10 = vadd.f32 %v1390_v43, %v586_v6  ;;  %v651_v11 = vadd.f32 %v1390_v43, %v650_v7  ;;  %v588_v12 = vpop.f32.mrb[7].mxu0  ;;  %v652_v13 = vpop.f32.mrb[7].mxu1 }
 0x10f   : > { %v1105_v14 = vpack.c.bf16 %v704_v8, %v704_v8  ;;  %v1121_v15 = vpack.c.bf16 %v720_v9, %v720_v9  ;;  %v705_v16 = vmax.f32 %v587_v10, 0.0  ;;  %v721_v17 = vmax.f32 %v651_v11, 0.0 }
 0x111   : > { %865 = vst.msk [vmem:[%s1400_s18 + $0x8] sm:$0xf] %vm862_vm1, %v1105_v14  ;;  %881 = vst.msk [vmem:[%s1400_s18 + $0x48] sm:$0xf] %vm862_vm1, %v1121_v15  ;;  %v1106_v18 = vpack.c.bf16 %v705_v16, %v705_v16  ;;  %v1122_v19 = vpack.c.bf16 %v721_v17, %v721_v17 }
 0x112   : > { %v591_v20 = vpop.f32.mrb[8].mxu0  ;;  %v655_v21 = vpop.f32.mrb[8].mxu1 }
 0x113   : > { %866 = vst.msk [vmem:[%s1400_s18 + $0xc] sm:$0xf] %vm862_vm1, %v1106_v18  ;;  %882 = vst.msk [vmem:[%s1400_s18 + $0x4c] sm:$0xf] %vm862_vm1, %v1122_v19  ;;  %v592_v22 = vadd.f32 %v1390_v43, %v591_v20  ;;  %v656_v23 = vadd.f32 %v1390_v43, %v655_v21  ;;  %v593_v24 = vpop.f32.mrb[9].mxu0  ;;  %v657_v25 = vpop.f32.mrb[9].mxu1 }
 0x114   : > { %v594_v26 = vpop.f32.mrb[10].mxu0  ;;  %v658_v27 = vpop.f32.mrb[10].mxu1 }
 0x115   : > { %v706_v28 = vmax.f32 %v592_v22, 0.0  ;;  %v722_v29 = vmax.f32 %v656_v23, 0.0  ;;  %v595_v30 = vadd.f32 %v1390_v43, %v594_v26  ;;  %v659_v31 = vadd.f32 %v1390_v43, %v658_v27  ;;  %v596_v32 = vpop.f32.mrb[11].mxu0  ;;  %v660_v33 = vpop.f32.mrb[11].mxu1 }
 0x117   : > { %v1107_v34 = vpack.c.bf16 %v706_v28, %v706_v28  ;;  %v1123_v35 = vpack.c.bf16 %v722_v29, %v722_v29  ;;  %v707_v36 = vmax.f32 %v595_v30, 0.0  ;;  %v723_v37 = vmax.f32 %v659_v31, 0.0 }
 0x119   : > { %867 = vst.msk [vmem:[%s1400_s18 + $0x10] sm:$0xf] %vm862_vm1, %v1107_v34  ;;  %883 = vst.msk [vmem:[%s1400_s18 + $0x50] sm:$0xf] %vm862_vm1, %v1123_v35  ;;  %v1108_v38 = vpack.c.bf16 %v707_v36, %v707_v36  ;;  %v1124_v39 = vpack.c.bf16 %v723_v37, %v723_v37 }
 0x11a   : > { %v599_v40 = vpop.f32.mrb[12].mxu0  ;;  %v663_v41 = vpop.f32.mrb[12].mxu1 }
 0x11b   : > { %868 = vst.msk [vmem:[%s1400_s18 + $0x14] sm:$0xf] %vm862_vm1, %v1108_v38  ;;  %884 = vst.msk [vmem:[%s1400_s18 + $0x54] sm:$0xf] %vm862_vm1, %v1124_v39  ;;  %v600_v42 = vadd.f32 %v1390_v43, %v599_v40  ;;  %v664_v44 = vadd.f32 %v1390_v43, %v663_v41  ;;  %v601_v45 = vpop.f32.mrb[13].mxu0  ;;  %v665_v46 = vpop.f32.mrb[13].mxu1 }
 0x11c   : > { %v602_v47 = vpop.f32.mrb[14].mxu0  ;;  %v666_v48 = vpop.f32.mrb[14].mxu1 }
 0x11d   : > { %v708_v49 = vmax.f32 %v600_v42, 0.0  ;;  %v724_v50 = vmax.f32 %v664_v44, 0.0  ;;  %v603_v51 = vadd.f32 %v1390_v43, %v602_v47  ;;  %v667_v52 = vadd.f32 %v1390_v43, %v666_v48  ;;  %v604_v53 = vpop.f32.mrb[15].mxu0  ;;  %v668_v54 = vpop.f32.mrb[15].mxu1 }
 0x11f   : > { %v1109_v55 = vpack.c.bf16 %v708_v49, %v708_v49  ;;  %v1125_v56 = vpack.c.bf16 %v724_v50, %v724_v50  ;;  %v709_v57 = vmax.f32 %v603_v51, 0.0  ;;  %v725_v58 = vmax.f32 %v667_v52, 0.0 }
 0x121   : > { %869 = vst.msk [vmem:[%s1400_s18 + $0x18] sm:$0xf] %vm862_vm1, %v1109_v55  ;;  %885 = vst.msk [vmem:[%s1400_s18 + $0x58] sm:$0xf] %vm862_vm1, %v1125_v56  ;;  %v1110_v59 = vpack.c.bf16 %v709_v57, %v709_v57  ;;  %v1126_v60 = vpack.c.bf16 %v725_v58, %v725_v58 }
 0x122   : > { %v607_v61 = vpop.f32.mrb[16].mxu0  ;;  %v671_v62 = vpop.f32.mrb[16].mxu1 }
 0x123   : > { %870 = vst.msk [vmem:[%s1400_s18 + $0x1c] sm:$0xf] %vm862_vm1, %v1110_v59  ;;  %886 = vst.msk [vmem:[%s1400_s18 + $0x5c] sm:$0xf] %vm862_vm1, %v1126_v60  ;;  %v608_v63 = vadd.f32 %v1390_v43, %v607_v61  ;;  %v672_v0 = vadd.f32 %v1390_v43, %v671_v62  ;;  %v609_v1 = vpop.f32.mrb[17].mxu0  ;;  %v673_v2 = vpop.f32.mrb[17].mxu1 }
 0x124   : > { %v610_v3 = vpop.f32.mrb[18].mxu0  ;;  %v674_v4 = vpop.f32.mrb[18].mxu1 }
 0x125   : > { %v710_v5 = vmax.f32 %v608_v63, 0.0  ;;  %v726_v6 = vmax.f32 %v672_v0, 0.0  ;;  %v611_v7 = vadd.f32 %v1390_v43, %v610_v3  ;;  %v675_v8 = vadd.f32 %v1390_v43, %v674_v4  ;;  %v612_v9 = vpop.f32.mrb[19].mxu0  ;;  %v676_v10 = vpop.f32.mrb[19].mxu1 }
 0x127   : > { %v1111_v11 = vpack.c.bf16 %v710_v5, %v710_v5  ;;  %v1127_v12 = vpack.c.bf16 %v726_v6, %v726_v6  ;;  %v711_v13 = vmax.f32 %v611_v7, 0.0  ;;  %v727_v14 = vmax.f32 %v675_v8, 0.0 }
 0x129   : > { %871 = vst.msk [vmem:[%s1400_s18 + $0x20] sm:$0xf] %vm862_vm1, %v1111_v11  ;;  %887 = vst.msk [vmem:[%s1400_s18 + $0x60] sm:$0xf] %vm862_vm1, %v1127_v12  ;;  %v1112_v15 = vpack.c.bf16 %v711_v13, %v711_v13  ;;  %v1128_v16 = vpack.c.bf16 %v727_v14, %v727_v14 }
 0x12a   : > { %v615_v17 = vpop.f32.mrb[20].mxu0  ;;  %v679_v18 = vpop.f32.mrb[20].mxu1 }
 0x12b   : > { %872 = vst.msk [vmem:[%s1400_s18 + $0x24] sm:$0xf] %vm862_vm1, %v1112_v15  ;;  %888 = vst.msk [vmem:[%s1400_s18 + $0x64] sm:$0xf] %vm862_vm1, %v1128_v16  ;;  %v616_v19 = vadd.f32 %v1390_v43, %v615_v17  ;;  %v680_v20 = vadd.f32 %v1390_v43, %v679_v18  ;;  %v617_v21 = vpop.f32.mrb[21].mxu0  ;;  %v681_v22 = vpop.f32.mrb[21].mxu1 }
 0x12c   : > { %v618_v23 = vpop.f32.mrb[22].mxu0  ;;  %v682_v24 = vpop.f32.mrb[22].mxu1 }
 0x12d   : > { %v712_v25 = vmax.f32 %v616_v19, 0.0  ;;  %v728_v26 = vmax.f32 %v680_v20, 0.0  ;;  %v619_v27 = vadd.f32 %v1390_v43, %v618_v23  ;;  %v683_v28 = vadd.f32 %v1390_v43, %v682_v24  ;;  %v620_v29 = vpop.f32.mrb[23].mxu0  ;;  %v684_v30 = vpop.f32.mrb[23].mxu1 }
 0x12f   : > { %v1113_v31 = vpack.c.bf16 %v712_v25, %v712_v25  ;;  %v1129_v32 = vpack.c.bf16 %v728_v26, %v728_v26  ;;  %v713_v33 = vmax.f32 %v619_v27, 0.0  ;;  %v729_v34 = vmax.f32 %v683_v28, 0.0 }
 0x131   : > { %873 = vst.msk [vmem:[%s1400_s18 + $0x28] sm:$0xf] %vm862_vm1, %v1113_v31  ;;  %889 = vst.msk [vmem:[%s1400_s18 + $0x68] sm:$0xf] %vm862_vm1, %v1129_v32  ;;  %v1114_v35 = vpack.c.bf16 %v713_v33, %v713_v33  ;;  %v1130_v36 = vpack.c.bf16 %v729_v34, %v729_v34 }
 0x132   : > { %v623_v37 = vpop.f32.mrb[24].mxu0  ;;  %v687_v38 = vpop.f32.mrb[24].mxu1 }
 0x133   : > { %874 = vst.msk [vmem:[%s1400_s18 + $0x2c] sm:$0xf] %vm862_vm1, %v1114_v35  ;;  %890 = vst.msk [vmem:[%s1400_s18 + $0x6c] sm:$0xf] %vm862_vm1, %v1130_v36  ;;  %v624_v39 = vadd.f32 %v1390_v43, %v623_v37  ;;  %v688_v40 = vadd.f32 %v1390_v43, %v687_v38  ;;  %v625_v41 = vpop.f32.mrb[25].mxu0  ;;  %v689_v42 = vpop.f32.mrb[25].mxu1 }
 0x134   : > { %v626_v44 = vpop.f32.mrb[26].mxu0  ;;  %v690_v45 = vpop.f32.mrb[26].mxu1 }
 0x135   : > { %v714_v46 = vmax.f32 %v624_v39, 0.0  ;;  %v730_v47 = vmax.f32 %v688_v40, 0.0  ;;  %v627_v48 = vadd.f32 %v1390_v43, %v626_v44  ;;  %v691_v49 = vadd.f32 %v1390_v43, %v690_v45  ;;  %v628_v50 = vpop.f32.mrb[27].mxu0  ;;  %v692_v51 = vpop.f32.mrb[27].mxu1 }
 0x137   : > { %v1115_v52 = vpack.c.bf16 %v714_v46, %v714_v46  ;;  %v1131_v53 = vpack.c.bf16 %v730_v47, %v730_v47  ;;  %v715_v54 = vmax.f32 %v627_v48, 0.0  ;;  %v731_v55 = vmax.f32 %v691_v49, 0.0 }
 0x139   : > { %875 = vst.msk [vmem:[%s1400_s18 + $0x30] sm:$0xf] %vm862_vm1, %v1115_v52  ;;  %891 = vst.msk [vmem:[%s1400_s18 + $0x70] sm:$0xf] %vm862_vm1, %v1131_v53  ;;  %v1116_v56 = vpack.c.bf16 %v715_v54, %v715_v54  ;;  %v1132_v57 = vpack.c.bf16 %v731_v55, %v731_v55 }
 0x13a   : > { %v631_v58 = vpop.f32.mrb[28].mxu0  ;;  %v695_v59 = vpop.f32.mrb[28].mxu1 }
 0x13b   : > { %876 = vst.msk [vmem:[%s1400_s18 + $0x34] sm:$0xf] %vm862_vm1, %v1116_v56  ;;  %892 = vst.msk [vmem:[%s1400_s18 + $0x74] sm:$0xf] %vm862_vm1, %v1132_v57  ;;  %v632_v60 = vadd.f32 %v1390_v43, %v631_v58  ;;  %v696_v61 = vadd.f32 %v1390_v43, %v695_v59  ;;  %v633_v62 = vpop.f32.mrb[29].mxu0  ;;  %v697_v63 = vpop.f32.mrb[29].mxu1 }
 0x13c   : > { %v634_v0 = vpop.f32.mrb[30].mxu0  ;;  %v698_v1 = vpop.f32.mrb[30].mxu1 }
 0x13d   : > { %v716_v2 = vmax.f32 %v632_v60, 0.0  ;;  %v732_v3 = vmax.f32 %v696_v61, 0.0  ;;  %v635_v4 = vadd.f32 %v1390_v43, %v634_v0  ;;  %v699_v5 = vadd.f32 %v1390_v43, %v698_v1  ;;  %v636_v6 = vpop.f32.mrb[31].mxu0  ;;  %v700_v7 = vpop.f32.mrb[31].mxu1 }
 0x13f   : > { %v1117_v8 = vpack.c.bf16 %v716_v2, %v716_v2  ;;  %v1133_v9 = vpack.c.bf16 %v732_v3, %v732_v3  ;;  %v717_v10 = vmax.f32 %v635_v4, 0.0  ;;  %v733_v11 = vmax.f32 %v699_v5, 0.0 }
 0x141   : > { %877 = vst.msk [vmem:[%s1400_s18 + $0x38] sm:$0xf] %vm862_vm1, %v1117_v8  ;;  %893 = vst.msk [vmem:[%s1400_s18 + $0x78] sm:$0xf] %vm862_vm1, %v1133_v9  ;;  %v1118_v12 = vpack.c.bf16 %v717_v10, %v717_v10  ;;  %v1134_v13 = vpack.c.bf16 %v733_v11, %v733_v11 }
 0x143   : > { %878 = vst.msk [vmem:[%s1400_s18 + $0x3c] sm:$0xf] %vm862_vm1, %v1118_v12  ;;  %894 = vst.msk [vmem:[%s1400_s18 + $0x7c] sm:$0xf] %vm862_vm1, %v1134_v13 }
 0x144 PF: > { %s13_s14 = sadd.s32 1, %s1260_s14   ;;  %s1507_s12 = smov %s1256_s13 }
 0x145   : > { %p10_p5 = scmp.ge.s32.totalorder %s13_s14, 10   ;;  %s1508_s13 = smov %s1510_s15 }
 0x147   :  { %12 = sbr.rel (!%p10_p5) target bundleno = 2 (0x2), region = 68 }

</bundles_post_ra>
